<compile_context>
chip_gen: v7x
topology: tpu7x:2x2x1
jax: 0.10.0
libtpu: 0.0.40
codegen_flags: <defaults>
</compile_context>

<pallas_src>
import jax
import jax.numpy as jnp
from jax.experimental import pallas as pl
from jax.experimental.pallas import tpu as pltpu


def _normalize_kernel(stats_ref, x_ref, o_ref):
    # stats_ref: VMEM (R, 2) — column 0 = 1/sd, column 1 = -mean/sd (per row).
    # x_ref / o_ref: VMEM (R, L) lane-dense tiles.
    scale = stats_ref[:, 0:1]                      # (R, 1), broadcast over lanes
    bias = stats_ref[:, 1:2]                       # (R, 1)
    x = x_ref[...].astype(scale.dtype)
    o_ref[...] = (x * scale + bias).astype(o_ref.dtype)


def _block_sizes(nc: int, hw: int, itemsize: int, target_bytes: int = 4 << 20):
    """Pick (row_block, lane_block) for the flattened (nc, hw) problem.

    Both dims are either a legal multiple (8*/128) or the full axis, and the
    per-input block is capped at `target_bytes` so double-buffered in+out stays
    well inside every generation's VMEM budget.
    """
    sub = max(8, 32 // itemsize)        # sublane packing multiple for dtype
    LANE = 128

    lane_tileable = hw > LANE and hw % LANE == 0
    row_tileable = nc > sub

    # Lane tile: full axis unless tileable; otherwise cap by the byte budget
    # assuming the minimal legal row block.
    if lane_tileable:
        r_min = sub if row_tileable else nc
        l_cap = max(LANE, (target_bytes // max(1, r_min * itemsize)) // LANE * LANE)
        l = min(hw, l_cap)
    else:
        l = hw

    # Row tile: full axis unless tileable; otherwise cap by the byte budget.
    if row_tileable:
        r_cap = max(sub, (target_bytes // max(1, l * itemsize)) // sub * sub)
        r = nc if r_cap >= nc else r_cap
    else:
        r = nc

    # Prefer >= 4 total grid steps (2 per v7x TensorCore, double-buffered) as
    # long as blocks stay large enough to amortize the ~0.35 us per-step cost.
    min_block_bytes = 256 * 1024
    while (pl.cdiv(nc, r) * pl.cdiv(hw, l) < 4
           and r * l * itemsize > min_block_bytes):
        can_split_r = row_tileable and r > sub
        can_split_l = lane_tileable and l > LANE
        if can_split_r and (r >= l or not can_split_l):
            r = max(sub, (r // 2) // sub * sub)
        elif can_split_l:
            l = max(LANE, (l // 2) // LANE * LANE)
        else:
            break

    return r, l


def normalize_layer(x: jax.Array, means: jax.Array, sds: jax.Array) -> jax.Array:
    """(x - means[c]) / sds[c] per channel; x is NCHW."""
    n, c, h, w = x.shape
    assert means.shape == (c,) and sds.shape == (c,)

    nc = n * c
    hw = h * w
    x2 = x.reshape(nc, hw)  # contiguous NCHW -> free reshape

    # Compute dtype: keep bf16 native (v6e/v7x bf16 VPU), otherwise f32 math.
    if x.dtype == jnp.bfloat16 or x.dtype == jnp.float32:
        stat_dtype = x.dtype
    else:
        stat_dtype = jnp.float32

    # Fused per-row stats: scale = 1/sd, bias = -mean/sd  (row = n*C + c).
    scale = 1.0 / sds.astype(jnp.float32)
    bias = -means.astype(jnp.float32) * scale
    stats = jnp.stack([scale, bias], axis=-1).astype(stat_dtype)   # (C, 2)
    stats = jnp.tile(stats, (n, 1))                                # (N*C, 2)

    r, l = _block_sizes(nc, hw, x.dtype.itemsize)
    grid = (pl.cdiv(nc, r), pl.cdiv(hw, l))

    grid_spec = pl.GridSpec(
        grid=grid,
        in_specs=[
            pl.BlockSpec((r, 2), lambda i, j: (i, 0)),   # fused [scale, bias]
            pl.BlockSpec((r, l), lambda i, j: (i, j)),   # x tile, lane-dense
        ],
        out_specs=pl.BlockSpec((r, l), lambda i, j: (i, j)),
    )

    out2 = pl.pallas_call(
        _normalize_kernel,
        out_shape=jax.ShapeDtypeStruct((nc, hw), x.dtype),
        grid_spec=grid_spec,
        compiler_params=pltpu.CompilerParams(
            dimension_semantics=("parallel", "parallel"),
            vmem_limit_bytes=48 * 1024 * 1024,
        ),
    )(stats, x2)

    return out2.reshape(n, c, h, w)


if __name__ == "__main__":
    # Deterministic "dataset statistics" (synthetic, CIFAR-like), 4 channels.
    means = jnp.array([0.4914, 0.4822, 0.4465, 0.5000], dtype=jnp.float32)
    sds = jnp.array([0.2471, 0.2435, 0.2616, 0.2500], dtype=jnp.float32)

    # Small NCHW input: batch=2, channels=4, spatial=16x16.
    key = jax.random.PRNGKey(0)
    x = jax.random.uniform(key, (2, 4, 16, 16), dtype=jnp.float32)

    out = normalize_layer(x, means, sds)
    out = jax.block_until_ready(out)

    # Reference check (plain JAX, identical broadcasting to the torch module).
    ref = (x - means[None, :, None, None]) / sds[None, :, None, None]
    assert out.shape == x.shape and out.dtype == x.dtype
    # Kernel uses x*(1/sd) + (-mean/sd) instead of (x-mean)/sd -> ~1-2 ulp diff.
    assert jnp.allclose(out, ref, atol=1e-5, rtol=1e-5)

    # Second small shape: odd channel count, exercises the 2-D BlockSpec path.
    means3 = means[:3]
    sds3 = sds[:3]
    x3 = jax.random.uniform(jax.random.PRNGKey(0), (3, 3, 16, 16), dtype=jnp.float32)
    out3 = jax.block_until_ready(normalize_layer(x3, means3, sds3))
    ref3 = (x3 - means3[None, :, None, None]) / sds3[None, :, None, None]
    assert jnp.allclose(out3, ref3, atol=1e-5, rtol=1e-5)

    print("KERNEL_OK")
</pallas_src>

<mosaic_0001>
module attributes {stable_mosaic.version = 11 : i64} {
  func.func @_normalize_kernel(%arg0: i32, %arg1: i32, %arg2: memref<8x2xf32, #tpu.memory_space<vmem>>, %arg3: memref<8x256xf32, #tpu.memory_space<vmem>>, %arg4: memref<8x256xf32, #tpu.memory_space<vmem>>) attributes {dimension_semantics = [#tpu.dimension_semantics<parallel>, #tpu.dimension_semantics<parallel>], iteration_bounds = array<i64: 1, 1>, scalar_prefetch = 0 : i64, scratch_operands = 0 : i64, tpu.core_type = #tpu.core_type<tc>, window_params = [{transform_indices = @transform_0, window_bounds = array<i64: 8, 2>}, {transform_indices = @transform_1, window_bounds = array<i64: 8, 256>}, {transform_indices = @transform_2, window_bounds = array<i64: 8, 256>}]} {
    %c0 = arith.constant 0 : index
    %c0_0 = arith.constant 0 : index
    %0 = vector.load %arg2[%c0, %c0_0] : memref<8x2xf32, #tpu.memory_space<vmem>>, vector<8x1xf32>
    %c0_1 = arith.constant 0 : index
    %c1 = arith.constant 1 : index
    %1 = vector.load %arg2[%c0_1, %c1] : memref<8x2xf32, #tpu.memory_space<vmem>>, vector<8x1xf32>
    %c0_2 = arith.constant 0 : index
    %c0_3 = arith.constant 0 : index
    %2 = vector.load %arg3[%c0_2, %c0_3] : memref<8x256xf32, #tpu.memory_space<vmem>>, vector<8x256xf32>
    %3 = vector.broadcast %0 : vector<8x1xf32> to vector<8x256xf32>
    %4 = arith.mulf %2, %3 : vector<8x256xf32>
    %5 = vector.broadcast %1 : vector<8x1xf32> to vector<8x256xf32>
    %6 = arith.addf %4, %5 : vector<8x256xf32>
    %c0_4 = arith.constant 0 : index
    %c0_5 = arith.constant 0 : index
    %7 = vector.load %arg4[%c0_4, %c0_5] : memref<8x256xf32, #tpu.memory_space<vmem>>, vector<8x256xf32>
    tpu.vector_store %arg4[%c0_4, %c0_5], %6 {strides = array<i32>} : memref<8x256xf32, #tpu.memory_space<vmem>>, vector<8x256xf32>,
    return
  }
  func.func @transform_0(%arg0: i32, %arg1: i32) -> (i32, i32) {
    %c0_i32 = arith.constant 0 : i32
    %c0_i32_0 = arith.constant 0 : i32
    return %arg0, %c0_i32 : i32, i32
  }
  func.func @transform_1(%arg0: i32, %arg1: i32) -> (i32, i32) {
    %c0_i32 = arith.constant 0 : i32
    return %arg0, %arg1 : i32, i32
  }
  func.func @transform_2(%arg0: i32, %arg1: i32) -> (i32, i32) {
    %c0_i32 = arith.constant 0 : i32
    return %arg0, %arg1 : i32, i32
  }
}

</mosaic_0001>

<bundles_post_ra>
// kernel: tpu_custom_call.1
= control target key start
LH: loop header
LB: loop body
LE: loop exit
PB: predicated region body
PF: predicated region fallthrough
CT: control target
= control target key end

     0   :  { %7 = vsyncpa [#allocation3], 0  ;;  %s157_s0 = inlined_call_operand.vmem [shape: f32[8,2], index: 0, kind: input, shape index: {}]   ;;  %s158_s1 = inlined_call_operand.hbm [shape: f32[8,256], index: 1, kind: input, shape index: {}]   ;;  %s159_s2 = inlined_call_operand.hbm [shape: f32[8,256], index: 2, kind: output, shape index: {}]  }
   0x1   :  { %8 = vsyncpa [#allocation4], 0  ;;  %s111_s9 = smov [#allocation2]   ;;  %s63_s13 = scalar_lea.hbm %s158_s1, 256 }
   0x2   :  { %s17_s10 = sshll.u32 %s111_s9, 4  ;;  %p64_p0 = scmp.ne.s32.totalorder %s158_s1, %s63_s13  ;;  %s18_s10 = int_to_ptr.vmem [resolvable:$true] %s17_s10 }
   0x3   :  { %p67_p1 = scmp.lt.u32.totalorder %s63_s13, %s158_s1 }
   0x5   :  { %p69_p2 = pnand %p67_p1, %p64_p0 }
   0x7   :  { %72 = shalt.err (!%p69_p2)
}
   0x8   :  { %s73_s18 = scalar_lea.vmem %s18_s10, 256  ;;  %p78_p4 = scmp.lt.s32.totalorder %s18_s10, %s18_s10 }
   0x9   :  { %p74_p3 = scmp.ne.s32.totalorder %s18_s10, %s73_s18  ;;  %p79_p5 = scmp.lt.s32.totalorder %s73_s18, %s73_s18 }
   0xb   :  { %p80_p6 = por %p79_p5, %p78_p4 }
   0xd   :  { %p81_p7 = pnand %p80_p6, %p74_p3 }
   0xf   :  { %84 = shalt.err (!%p81_p7)
}
  0x10   :  { %20 = dma.hbm_to_vmem [thread:$0]  %s158_s1, 256, %s18_s10, [#allocation3]  }
  0x11   :  { %107 = dma.done.wait [#allocation3], 256  }
  0x12   :  { %108 = vsyncadd [#allocation3], 4294967040  ;;  %v112_v0 = vmov 0   ;;  %v24_v1 = vld [vmem:[%s157_s0] sm:$0xff]  ;;  %v113_v2 = vmov 1   ;;  %v26_v5 = vld [vmem:[#allocation2 + $0x8] sm:$0xff] }
  0x13   :  { %61 = vset.pattern.permute.xlu0 %v112_v0  ;;  %v25_v4 = vld [vmem:[#allocation2] sm:$0xff]  ;;  %s114_s23 = smov [#allocation5]  }
  0x14   :  { %29 = vperm.xlu0 %61, %v24_v1   ;;  %s48_s24 = sshll.u32 %s114_s23, 4  ;;  %s49_s24 = int_to_ptr.vmem [resolvable:$true] %s48_s24 }
  0x15   :  { %s85_s1 = scalar_lea.vmem %s49_s24, 256  ;;  %p90_p9 = scmp.lt.s32.totalorder %s49_s24, %s49_s24 }
  0x16   :  { %p86_p8 = scmp.ne.s32.totalorder %s49_s24, %s85_s1  ;;  %p91_p10 = scmp.lt.s32.totalorder %s85_s1, %s85_s1 }
  0x18   :  { %62 = vset.pattern.permute.xlu0 %v113_v2  ;;  %p92_p11 = por %p91_p10, %p90_p9 }
  0x19   :  { %35 = vperm.xlu0 %62, %v24_v1  }
  0x1a   :  { %p93_p12 = pnand %p92_p11, %p86_p8 }
  0x93   :  { %v30_v3 = vpop.permute.xlu0 %29 }
  0x94   :  { %v32_v6 = vmul.f32 %v30_v3, %v25_v4  ;;  %v33_v7 = vmul.f32 %v30_v3, %v26_v5 }
  0x98   :  { %v36_v8 = vpop.permute.xlu0 %35 }
  0x99   :  { %v38_v9 = vadd.f32 %v36_v8, %v32_v6  ;;  %v39_v10 = vadd.f32 %v36_v8, %v33_v7 }
  0x9b   :  { %40 = vst [vmem:[#allocation5] sm:$0xff] %v38_v9  ;;  %41 = vst [vmem:[#allocation5 + $0x8] sm:$0xff] %v39_v10 }
  0x9c   :  { %96 = shalt.err (!%p93_p12)
}
  0x9d   :  { %s97_s26 = scalar_lea.hbm %s159_s2, 256 }
  0x9e   :  { %p98_p13 = scmp.ne.s32.totalorder %s159_s2, %s97_s26  ;;  %p101_p0 = scmp.lt.u32.totalorder %s97_s26, %s159_s2 }
  0xa0   :  { %p103_p1 = pnand %p101_p0, %p98_p13 }
  0xa2   :  { %106 = shalt.err (!%p103_p1)
}
  0xa3   :  { %51 = dma.vmem_to_hbm [thread:$0]  %s49_s24, 256, %s159_s2, [#allocation4]  }
  0xa4   :  { %109 = dma.done.wait [#allocation4], 256  }
  0xa5   :  { %110 = vsyncadd [#allocation4], 4294967040 }
  0xa6   :  { %55 = vsyncpa [#allocation3], 1 }
  0xa7   :  { %56 = vsyncpa [#allocation4], 1 }

</bundles_post_ra>
